<compile_context>
chip_gen: v5e
topology: v5e:2x2
jax: 0.10.0
libtpu: 0.0.40
codegen_flags: <defaults>
</compile_context>

<pallas_src>
import functools

import jax
import jax.numpy as jnp
from jax.experimental import pallas as pl
from jax.experimental.pallas import tpu as pltpu

_LANE = 128


def channel_attention_kernel(x_ref, w1t_ref, w2t_ref, o_ref,
                             sum_acc, max_acc, *, hw_total, thw):
    # x_ref:   (Bt, C, THW)  spatial tile of Bt batch rows
    # w1t_ref: (C, Hid)      fc1 weight, transposed  (Hid = C // 16)
    # w2t_ref: (Hid, C)      fc2 weight, transposed
    # o_ref:   (Bt, C)       sigmoid(fc2(relu(fc1(avg))) + fc2(relu(fc1(max))))
    # sum_acc / max_acc: (Bt, C) f32 VMEM accumulators across the spatial grid axis.
    k = pl.program_id(1)
    nk = pl.num_programs(1)

    x = x_ref[...].astype(jnp.float32)                      # (Bt, C, THW)

    if hw_total % thw != 0:
        # Mask the padded tail tile: padded lanes contribute 0 to the sum and
        # -inf to the max.
        lane = jax.lax.broadcasted_iota(jnp.int32, x.shape, dimension=2)
        valid = (k * thw + lane) < hw_total
        x_sum = jnp.where(valid, x, 0.0)
        x_max = jnp.where(valid, x, -jnp.inf)
    else:
        x_sum = x
        x_max = x

    part_sum = jnp.sum(x_sum, axis=-1)                      # (Bt, C)
    part_max = jnp.max(x_max, axis=-1)                      # (Bt, C)

    @pl.when(k == 0)
    def _():
        sum_acc[...] = part_sum
        max_acc[...] = part_max

    @pl.when(k > 0)
    def _():
        sum_acc[...] = sum_acc[...] + part_sum
        max_acc[...] = jnp.maximum(max_acc[...], part_max)

    @pl.when(k == nk - 1)
    def _():
        bt = sum_acc.shape[0]
        avg_v = sum_acc[...] * (1.0 / hw_total)             # (Bt, C)  == mean
        max_v = max_acc[...]                                # (Bt, C)
        # Stack both pooling branches -> one fc1 dot and one fc2 dot.
        pooled = jnp.concatenate([avg_v, max_v], axis=0)    # (2*Bt, C)
        h = jnp.maximum(
            jnp.dot(pooled, w1t_ref[...], preferred_element_type=jnp.float32),
            0.0)                                            # (2*Bt, Hid)
        y = jnp.dot(h, w2t_ref[...],
                    preferred_element_type=jnp.float32)     # (2*Bt, C)
        out = jax.nn.sigmoid(y[:bt] + y[bt:])               # (Bt, C)
        o_ref[...] = out.astype(o_ref.dtype)


def _pick_tiles(B, C, HW, itemsize, x_block_budget):
    """Choose (Bt, THW) so one x block stays near x_block_budget bytes."""
    row_bytes = C * HW * itemsize
    if row_bytes <= x_block_budget:
        thw = HW                                 # full spatial extent per row
    else:
        thw = max(_LANE,
                  (x_block_budget // (C * itemsize)) // _LANE * _LANE)
    blk_rows = max(1, x_block_budget // (C * thw * itemsize))
    if blk_rows >= B:
        bt = B
    else:
        # Bt must divide B and (be a multiple of 8 or equal B) so the (Bt, C)
        # output block satisfies the (8, 128) tiling rule.
        bt = B
        for cand in range(min(blk_rows, B), 0, -1):
            if B % cand == 0 and cand % 8 == 0:
                bt = cand
                break
    return bt, thw


def channel_attention(x, w1, w2, *, x_block_budget=8 * 1024 * 1024):
    """x: (B, C, H, W); w1: (C//16, C, 1, 1); w2: (C, C//16, 1, 1)."""
    B, C, H, W = x.shape
    hid = w1.shape[0]
    HW = H * W

    x_flat = x.reshape(B, C, HW)                       # keep HBM dtype as-is
    w1t = w1.reshape(hid, C).T.astype(jnp.float32)     # (C, hid)
    w2t = w2.reshape(C, hid).T.astype(jnp.float32)     # (hid, C)

    itemsize = jnp.dtype(x_flat.dtype).itemsize
    bt, thw = _pick_tiles(B, C, HW, itemsize, x_block_budget)
    n_b = B // bt
    n_k = pl.cdiv(HW, thw)

    kernel = functools.partial(channel_attention_kernel,
                               hw_total=HW, thw=thw)

    cost = pl.CostEstimate(
        flops=2 * (2 * B) * C * hid * 2,               # fc1 + fc2 on (2B, C)
        transcendentals=B * C,                          # sigmoid
        bytes_accessed=B * C * HW * itemsize + (2 * C * hid + B * C) * 4,
    )

    out = pl.pallas_call(
        kernel,
        out_shape=jax.ShapeDtypeStruct((B, C), jnp.float32),
        grid=(n_b, n_k),
        in_specs=[
            pl.BlockSpec((bt, C, thw), lambda b, k: (b, 0, k)),
            pl.BlockSpec((C, hid), lambda b, k: (0, 0)),
            pl.BlockSpec((hid, C), lambda b, k: (0, 0)),
        ],
        out_specs=pl.BlockSpec((bt, C), lambda b, k: (b, 0)),
        scratch_shapes=[
            pltpu.VMEM((bt, C), jnp.float32),           # running sum
            pltpu.VMEM((bt, C), jnp.float32),           # running max
        ],
        compiler_params=pltpu.CompilerParams(
            dimension_semantics=("parallel", "arbitrary"),
            vmem_limit_bytes=48 * 1024 * 1024,
        ),
        cost_estimate=cost,
    )(x_flat, w1t, w2t)

    # PyTorch module returns (B, C, 1, 1)
    return out.reshape(B, C, 1, 1)


def channel_attention_ref(x, w1, w2):
    """Pure-JAX reference mirroring the PyTorch forward."""
    B, C, H, W = x.shape
    hid = w1.shape[0]
    w1m = w1.reshape(hid, C)
    w2m = w2.reshape(C, hid)
    avg = jnp.mean(x.astype(jnp.float32), axis=(2, 3))   # (B, C)
    mx = jnp.max(x.astype(jnp.float32), axis=(2, 3))     # (B, C)

    def branch(p):
        h = jnp.maximum(p @ w1m.T, 0.0)
        return h @ w2m.T

    out = jax.nn.sigmoid(branch(avg) + branch(mx))
    return out.reshape(B, C, 1, 1)


if __name__ == "__main__":
    key = jax.random.PRNGKey(0)
    kx, k1, k2, kx2 = jax.random.split(key, 4)

    # --- Case 1: small shape, whole (B, C, HW) in one grid step -------------
    B, C, H, W = 2, 32, 16, 16          # in_planes=32 -> hidden = 32 // 16 = 2
    hid = C // 16
    x = jax.random.normal(kx, (B, C, H, W), dtype=jnp.float32)
    w1 = jax.random.normal(k1, (hid, C, 1, 1), dtype=jnp.float32) * (2.0 / C) ** 0.5
    w2 = jax.random.normal(k2, (C, hid, 1, 1), dtype=jnp.float32) * (2.0 / hid) ** 0.5

    out = jax.block_until_ready(channel_attention(x, w1, w2))
    ref = channel_attention_ref(x, w1, w2)
    assert out.shape == (B, C, 1, 1)
    assert jnp.allclose(out, ref, atol=1e-5, rtol=1e-5), "mismatch vs reference (case 1)"

    # --- Case 2: force the spatial-tiling + masking path (HW % THW != 0) ----
    H2, W2 = 18, 18                     # HW = 324 -> 3 spatial tiles of 128
    x2 = jax.random.normal(kx2, (B, C, H2, W2), dtype=jnp.float32)
    out2 = jax.block_until_ready(
        channel_attention(x2, w1, w2, x_block_budget=20_000))
    ref2 = channel_attention_ref(x2, w1, w2)
    assert out2.shape == (B, C, 1, 1)
    assert jnp.allclose(out2, ref2, atol=1e-5, rtol=1e-5), "mismatch vs reference (case 2)"

    print("KERNEL_OK")
</pallas_src>

<mosaic_0001>
module attributes {stable_mosaic.version = 11 : i64} {
  func.func @channel_attention_kernel(%arg0: i32, %arg1: i32, %arg2: memref<2x32x256xf32, #tpu.memory_space<vmem>>, %arg3: memref<32x2xf32, #tpu.memory_space<vmem>>, %arg4: memref<2x32xf32, #tpu.memory_space<vmem>>, %arg5: memref<2x32xf32, #tpu.memory_space<vmem>>, %arg6: memref<2x32xf32, #tpu.memory_space<vmem>>, %arg7: memref<2x32xf32, #tpu.memory_space<vmem>>) attributes {dimension_semantics = [#tpu.dimension_semantics<parallel>, #tpu.dimension_semantics<arbitrary>], iteration_bounds = array<i64: 1, 1>, scalar_prefetch = 0 : i64, scratch_operands = 2 : i64, tpu.core_type = #tpu.core_type<tc>, window_params = [{transform_indices = @transform_0, window_bounds = array<i64: 2, 32, 256>}, {pipeline_mode = #tpu.pipeline_mode<synchronous>, transform_indices = @transform_1, window_bounds = array<i64: 32, 2>}, {pipeline_mode = #tpu.pipeline_mode<synchronous>, transform_indices = @transform_2, window_bounds = array<i64: 2, 32>}, {transform_indices = @transform_3, window_bounds = array<i64: 2, 32>}]} {
    %c0 = arith.constant 0 : index
    %c0_0 = arith.constant 0 : index
    %c0_1 = arith.constant 0 : index
    %0 = vector.load %arg2[%c0, %c0_0, %c0_1] : memref<2x32x256xf32, #tpu.memory_space<vmem>>, vector<2x32x256xf32>
    %cst = arith.constant dense<0.000000e+00> : vector<2x32xf32>
    %1 = vector.multi_reduction <add>, %0, %cst [2] : vector<2x32x256xf32> to vector<2x32xf32>
    %cst_2 = arith.constant dense<0xFF800000> : vector<2x32xf32>
    %2 = vector.multi_reduction <maximumf>, %0, %cst_2 [2] : vector<2x32x256xf32> to vector<2x32xf32>
    %c0_i32 = arith.constant 0 : i32
    %3 = arith.cmpi eq, %arg1, %c0_i32 : i32
    %4 = arith.extui %3 : i1 to i32
    %c0_i32_3 = arith.constant 0 : i32
    %5 = arith.cmpi ne, %4, %c0_i32_3 : i32
    scf.if %5 {
      %c0_8 = arith.constant 0 : index
      %c0_9 = arith.constant 0 : index
      %12 = vector.load %arg6[%c0_8, %c0_9] : memref<2x32xf32, #tpu.memory_space<vmem>>, vector<2x32xf32>
      tpu.vector_store %arg6[%c0_8, %c0_9], %1 {strides = array<i32>} : memref<2x32xf32, #tpu.memory_space<vmem>>, vector<2x32xf32>,
      %c0_10 = arith.constant 0 : index
      %c0_11 = arith.constant 0 : index
      %13 = vector.load %arg7[%c0_10, %c0_11] : memref<2x32xf32, #tpu.memory_space<vmem>>, vector<2x32xf32>
      tpu.vector_store %arg7[%c0_10, %c0_11], %2 {strides = array<i32>} : memref<2x32xf32, #tpu.memory_space<vmem>>, vector<2x32xf32>,
    } else {
    }
    %c0_i32_4 = arith.constant 0 : i32
    %6 = arith.cmpi sgt, %arg1, %c0_i32_4 : i32
    %7 = arith.extui %6 : i1 to i32
    %c0_i32_5 = arith.constant 0 : i32
    %8 = arith.cmpi ne, %7, %c0_i32_5 : i32
    scf.if %8 {
      %c0_8 = arith.constant 0 : index
      %c0_9 = arith.constant 0 : index
      %12 = vector.load %arg6[%c0_8, %c0_9] : memref<2x32xf32, #tpu.memory_space<vmem>>, vector<2x32xf32>
      %13 = arith.addf %12, %1 : vector<2x32xf32>
      %c0_10 = arith.constant 0 : index
      %c0_11 = arith.constant 0 : index
      %14 = vector.load %arg6[%c0_10, %c0_11] : memref<2x32xf32, #tpu.memory_space<vmem>>, vector<2x32xf32>
      tpu.vector_store %arg6[%c0_10, %c0_11], %13 {strides = array<i32>} : memref<2x32xf32, #tpu.memory_space<vmem>>, vector<2x32xf32>,
      %c0_12 = arith.constant 0 : index
      %c0_13 = arith.constant 0 : index
      %15 = vector.load %arg7[%c0_12, %c0_13] : memref<2x32xf32, #tpu.memory_space<vmem>>, vector<2x32xf32>
      %16 = arith.maximumf %15, %2 : vector<2x32xf32>
      %c0_14 = arith.constant 0 : index
      %c0_15 = arith.constant 0 : index
      %17 = vector.load %arg7[%c0_14, %c0_15] : memref<2x32xf32, #tpu.memory_space<vmem>>, vector<2x32xf32>
      tpu.vector_store %arg7[%c0_14, %c0_15], %16 {strides = array<i32>} : memref<2x32xf32, #tpu.memory_space<vmem>>, vector<2x32xf32>,
    } else {
    }
    %c0_i32_6 = arith.constant 0 : i32
    %9 = arith.cmpi eq, %arg1, %c0_i32_6 : i32
    %10 = arith.extui %9 : i1 to i32
    %c0_i32_7 = arith.constant 0 : i32
    %11 = arith.cmpi ne, %10, %c0_i32_7 : i32
    scf.if %11 {
      %c0_8 = arith.constant 0 : index
      %c0_9 = arith.constant 0 : index
      %12 = vector.load %arg6[%c0_8, %c0_9] : memref<2x32xf32, #tpu.memory_space<vmem>>, vector<2x32xf32>
      %cst_10 = arith.constant 3.906250e-03 : f32
      %13 = vector.broadcast %cst_10 : f32 to vector<2x32xf32>
      %14 = arith.mulf %12, %13 : vector<2x32xf32>
      %c0_11 = arith.constant 0 : index
      %c0_12 = arith.constant 0 : index
      %15 = vector.load %arg7[%c0_11, %c0_12] : memref<2x32xf32, #tpu.memory_space<vmem>>, vector<2x32xf32>
      %16 = tpu.concatenate %14, %15 in 0 : vector<2x32xf32>, vector<2x32xf32> -> vector<4x32xf32>
      %c0_13 = arith.constant 0 : index
      %c0_14 = arith.constant 0 : index
      %17 = vector.load %arg3[%c0_13, %c0_14] : memref<32x2xf32, #tpu.memory_space<vmem>>, vector<32x2xf32>
      %cst_15 = arith.constant dense<0.000000e+00> : vector<4x2xf32>
      %18 = tpu.matmul %16, %17, %cst_15 {dimension_numbers = #tpu.dot_dimension_numbers<[1], [0], [0], [1], [0, 0, 1, 1], [], []>} : vector<4x32xf32>, vector<32x2xf32>, vector<4x2xf32> -> vector<4x2xf32>
      %cst_16 = arith.constant 0.000000e+00 : f32
      %19 = vector.broadcast %cst_16 : f32 to vector<4x2xf32>
      %20 = arith.maximumf %18, %19 : vector<4x2xf32>
      %c0_17 = arith.constant 0 : index
      %c0_18 = arith.constant 0 : index
      %21 = vector.load %arg4[%c0_17, %c0_18] : memref<2x32xf32, #tpu.memory_space<vmem>>, vector<2x32xf32>
      %cst_19 = arith.constant dense<0.000000e+00> : vector<4x32xf32>
      %22 = tpu.matmul %20, %21, %cst_19 {dimension_numbers = #tpu.dot_dimension_numbers<[1], [0], [0], [1], [0, 0, 1, 1], [], []>} : vector<4x2xf32>, vector<2x32xf32>, vector<4x32xf32> -> vector<4x32xf32>
      %23 = vector.extract_strided_slice %22 {offsets = [0, 0], sizes = [2, 32], strides = [1, 1]} : vector<4x32xf32> to vector<2x32xf32>
      %24 = vector.extract_strided_slice %22 {offsets = [2, 0], sizes = [2, 32], strides = [1, 1]} : vector<4x32xf32> to vector<2x32xf32>
      %25 = arith.addf %23, %24 : vector<2x32xf32>
      %26 = arith.negf %25 : vector<2x32xf32>
      %27 = math.exp %26 : vector<2x32xf32>
      %cst_20 = arith.constant 1.000000e+00 : f32
      %28 = vector.broadcast %cst_20 : f32 to vector<2x32xf32>
      %29 = arith.addf %28, %27 : vector<2x32xf32>
      %30 = arith.divf %28, %29 : vector<2x32xf32>
      %c0_21 = arith.constant 0 : index
      %c0_22 = arith.constant 0 : index
      %31 = vector.load %arg5[%c0_21, %c0_22] : memref<2x32xf32, #tpu.memory_space<vmem>>, vector<2x32xf32>
      tpu.vector_store %arg5[%c0_21, %c0_22], %30 {strides = array<i32>} : memref<2x32xf32, #tpu.memory_space<vmem>>, vector<2x32xf32>,
    } else {
    }
    return
  }
  func.func @transform_0(%arg0: i32, %arg1: i32) -> (i32, i32, i32) {
    %c0_i32 = arith.constant 0 : i32
    %c0_i32_0 = arith.constant 0 : i32
    return %arg0, %c0_i32, %arg1 : i32, i32, i32
  }
  func.func @transform_1(%arg0: i32, %arg1: i32) -> (i32, i32) {
    %c0_i32 = arith.constant 0 : i32
    %c0_i32_0 = arith.constant 0 : i32
    %c0_i32_1 = arith.constant 0 : i32
    return %c0_i32, %c0_i32_0 : i32, i32
  }
  func.func @transform_2(%arg0: i32, %arg1: i32) -> (i32, i32) {
    %c0_i32 = arith.constant 0 : i32
    %c0_i32_0 = arith.constant 0 : i32
    %c0_i32_1 = arith.constant 0 : i32
    return %c0_i32, %c0_i32_0 : i32, i32
  }
  func.func @transform_3(%arg0: i32, %arg1: i32) -> (i32, i32) {
    %c0_i32 = arith.constant 0 : i32
    %c0_i32_0 = arith.constant 0 : i32
    return %arg0, %c0_i32 : i32, i32
  }
}

</mosaic_0001>

<bundles_post_ra>
// kernel: tpu_custom_call.1
= control target key start
LH: loop header
LB: loop body
LE: loop exit
PB: predicated region body
PF: predicated region fallthrough
CT: control target
= control target key end

     0   :  { %8 = vsyncpa [#allocation5], 0  ;;  %s463_s0 = inlined_call_operand.hbm [shape: f32[2,32,256], index: 0, kind: input, shape index: {}]   ;;  %s464_s1 = inlined_call_operand.vmem [shape: f32[32,2], index: 1, kind: input, shape index: {}]   ;;  %s465_s2 = inlined_call_operand.vmem [shape: f32[2,32], index: 2, kind: input, shape index: {}]   ;;  %s466_s3 = inlined_call_operand.hbm [shape: f32[2,32], index: 3, kind: output, shape index: {}]  }
   0x1   :  { %9 = vsyncpa [#allocation6], 0  ;;  %s14_s14 = sshll.u32 %s463_s0, 4  ;;  %s401_s15 = smov [#allocation4]   ;;  %s15_s14 = int_to_ptr.hbm [resolvable:$true] %s14_s14 }
   0x2   :  { %s16_s16 = sshll.u32 %s401_s15, 4  ;;  %s402_s17 = smov 256   ;;  %s17_s16 = int_to_ptr.vmem [resolvable:$true] %s16_s16 }
   0x3   :  { %s403_s18 = smov 16  }
   0x4   :  { %22 = dma.hbm_to_vmem [thread:$0]  %s15_s14, 2048, %s17_s16, [#allocation5], %s402_s17, %s402_s17, %s403_s18  }
   0x5   :  { %397 = dma.done.wait [#allocation5], 2048  }
   0x6   :  { %398 = vsyncadd [#allocation5], 4294965248  ;;  %v39_v0 = vld [vmem:[#allocation4 + $0x40] sm:$0xff]  ;;  %v40_v1 = vld [vmem:[#allocation4 + $0x48] sm:$0xff]  ;;  %v107_v45 = vlaneseq  ;;  %vm112_vm0 = vcmask 130112   ;;  %vm116_vm1 = vcmask 195712  }
   0x7   :  { %v31_v2 = vld [vmem:[#allocation4] sm:$0xff]  ;;  %v59_v3 = vadd.f32 %v40_v1, %v39_v0  ;;  %v32_v4 = vld [vmem:[#allocation4 + $0x8] sm:$0xff]  ;;  %v41_v7 = vld [vmem:[#allocation4 + $0x50] sm:$0xff]  ;;  %v83_v18 = vmax.f32 %v39_v0, %v40_v1  ;;  %vm120_vm2 = vcmask 261312   ;;  %vm129_vm3 = vcmask 1041409   ;;  %s327_s30 = sshll.u32 %s466_s3, 4  ;;  %s328_s30 = int_to_ptr.hbm [resolvable:$true] %s327_s30 }
   0x8   :  { %v71_v5 = vmax.f32 %v31_v2, %v32_v4  ;;  %v47_v6 = vadd.f32 %v32_v4, %v31_v2  ;;  %v42_v8 = vld [vmem:[#allocation4 + $0x58] sm:$0xff]  ;;  %v33_v9 = vld [vmem:[#allocation4 + $0x10] sm:$0xff]  ;;  %v35_v14 = vld [vmem:[#allocation4 + $0x20] sm:$0xff]  ;;  %v108_v46 = vand.u32 127, %v107_v45  ;;  %vm132_vm4 = vcmask 254976  }
   0x9   :  { %60 = vadd.xlane.f32.xlu1 %v59_v3  ;;  %v34_v10 = vld [vmem:[#allocation4 + $0x18] sm:$0xff]  ;;  %v62_v11 = vadd.f32 %v42_v8, %v41_v7  ;;  %v36_v15 = vld [vmem:[#allocation4 + $0x28] sm:$0xff]  ;;  %v86_v16 = vmax.f32 %v41_v7, %v42_v8  ;;  %v43_v19 = vld [vmem:[#allocation4 + $0x60] sm:$0xff]  ;;  %vm236_vm5 = vcmask 1041408   ;;  %vm242_vm6 = vcmask 261120  }
   0xa   :  { %72 = vmax.xlane.f32.xlu2 %v71_v5  ;;  %48 = vadd.xlane.f32.xlu0 %v47_v6  ;;  %v74_v12 = vmax.f32 %v33_v9, %v34_v10  ;;  %v50_v13 = vadd.f32 %v34_v10, %v33_v9  ;;  %v53_v17 = vadd.f32 %v36_v15, %v35_v14  ;;  %v44_v20 = vld [vmem:[#allocation4 + $0x68] sm:$0xff]  ;;  %v45_v24 = vld [vmem:[#allocation4 + $0x70] sm:$0xff]  ;;  %v46_v25 = vld [vmem:[#allocation4 + $0x78] sm:$0xff]  ;;  %v110_v48 = vadd.s32 4294967288, %v108_v46 }
   0xb   :  { %v77_v21 = vmax.f32 %v35_v14, %v36_v15  ;;  %v89_v22 = vmax.f32 %v43_v19, %v44_v20  ;;  %v65_v23 = vadd.f32 %v44_v20, %v43_v19  ;;  %v37_v26 = vld [vmem:[#allocation4 + $0x30] sm:$0xff]  ;;  %v38_v27 = vld [vmem:[#allocation4 + $0x38] sm:$0xff]  ;;  %v68_v28 = vadd.f32 %v46_v25, %v45_v24  ;;  %v239_v41 = vld [vmem:[%s464_s1 + $0x8] sm:$0xff] }
   0xc   :  { %v80_v29 = vmax.f32 %v37_v26, %v38_v27  ;;  %v56_v30 = vadd.f32 %v38_v27, %v37_v26  ;;  %v92_v31 = vmax.f32 %v45_v24, %v46_v25  ;;  %v241_v38 = vld [vmem:[%s464_s1 + $0x18] sm:$0xff]  ;;  %v240_v39 = vld [vmem:[%s464_s1 + $0x10] sm:$0xff]  ;;  %v238_v44 = vld [vmem:[%s464_s1] sm:$0xff]  ;;  %v114_v50 = vadd.s32 4294967280, %v108_v46 }
   0xd   :  { %258 = vmatpush.msra.mxu0 %v241_v38  ;;  %v118_v54 = vadd.s32 4294967272, %v108_v46  ;;  %vm268_vm7 = vcmask 15360  }
   0xf   :  { %259 = vmatpush.msra.mxu0 %v240_v39 }
  0x11   :  { %63 = vadd.xlane.f32.xlu1 %v62_v11  ;;  %260 = vmatpush.msra.mxu0 %v239_v41 }
  0x12   :  { %75 = vmax.xlane.f32.xlu2 %v74_v12  ;;  %51 = vadd.xlane.f32.xlu0 %v50_v13 }
  0x13   :  { %261 = vmatpush.msra.mxu0 %v238_v44 }
  0x19   :  { %87 = vmax.xlane.f32.xlu1 %v86_v16 }
  0x1a   :  { %54 = vadd.xlane.f32.xlu2 %v53_v17  ;;  %84 = vmax.xlane.f32.xlu0 %v83_v18 }
  0x21   :  { %78 = vmax.xlane.f32.xlu1 %v77_v21 }
  0x22   :  { %90 = vmax.xlane.f32.xlu2 %v89_v22  ;;  %66 = vadd.xlane.f32.xlu0 %v65_v23 }
  0x29   :  { %69 = vadd.xlane.f32.xlu1 %v68_v28  ;;  %v267_v28 = vld [vmem:[%s465_s2] sm:$0x3]  ;;  %s404_s2 = smov [#allocation7]  }
  0x2a   :  { %81 = vmax.xlane.f32.xlu2 %v80_v29  ;;  %57 = vadd.xlane.f32.xlu0 %v56_v30  ;;  %s325_s27 = sshll.u32 %s404_s2, 4  ;;  %s326_s27 = int_to_ptr.vmem [resolvable:$true] %s325_s27 }
  0x2b   :  { %338 = vmatpush.msk.msra.mxu1 %vm236_vm5, %v267_v28 }
  0x32   :  { %93 = vmax.xlane.f32.xlu0 %v92_v31 }
  0x7c   :  { %v61_v32 = vpop.xlane.xlu1 %60 }
  0x7d   :  { %v73_v33 = vpop.xlane.xlu2 %72  ;;  %v49_v34 = vpop.xlane.xlu0 %48  ;;  %v122_v52 = vperm.slane %v61_v32, %v108_v46 }
  0x7e   :  { %v109_v58 = vperm.slane %v49_v34, %v108_v46  ;;  %v142_v7 = vperm.slane %v73_v33, %v108_v46 }
  0x84   :  { %v64_v35 = vpop.xlane.xlu1 %63 }
  0x85   :  { %v76_v36 = vpop.xlane.xlu2 %75  ;;  %v52_v37 = vpop.xlane.xlu0 %51  ;;  %v123_v53 = vperm.slane %v64_v35, %v110_v48 }
  0x86   :  { %v111_v55 = vperm.slane %v52_v37, %v110_v48  ;;  %v143_v8 = vperm.slane %v76_v36, %v110_v48 }
  0x87   :  { %v124_v60 = vsel %vm112_vm0, %v123_v53, %v122_v52 }
  0x88   :  { %v113_v63 = vsel %vm112_vm0, %v111_v55, %v109_v58  ;;  %v144_v15 = vsel %vm112_vm0, %v143_v8, %v142_v7 }
  0x8c   :  { %v88_v40 = vpop.xlane.xlu1 %87 }
  0x8d   :  { %v55_v42 = vpop.xlane.xlu2 %54  ;;  %v85_v43 = vpop.xlane.xlu0 %84  ;;  %v150_v9 = vperm.slane %v88_v40, %v110_v48 }
  0x8e   :  { %v115_v57 = vperm.slane %v55_v42, %v114_v50  ;;  %v149_v10 = vperm.slane %v85_v43, %v108_v46 }
  0x90   :  { %v117_v2 = vsel %vm116_vm1, %v115_v57, %v113_v63  ;;  %v151_v16 = vsel %vm112_vm0, %v150_v9, %v149_v10 }
  0x94   :  { %v79_v47 = vpop.xlane.xlu1 %78 }
  0x95   :  { %v67_v49 = vpop.xlane.xlu0 %66  ;;  %v91_v51 = vpop.xlane.xlu2 %90  ;;  %v145_v11 = vperm.slane %v79_v47, %v114_v50 }
  0x96   :  { %v125_v56 = vperm.slane %v67_v49, %v114_v50  ;;  %v152_v12 = vperm.slane %v91_v51, %v114_v50 }
  0x97   :  { %v146_v18 = vsel %vm116_vm1, %v145_v11, %v144_v15 }
  0x98   :  { %v126_v0 = vsel %vm116_vm1, %v125_v56, %v124_v60  ;;  %v153_v19 = vsel %vm116_vm1, %v152_v12, %v151_v16 }
  0x9c   :  { %v70_v59 = vpop.xlane.xlu1 %69 }
  0x9d   :  { %v127_v61 = vperm.slane %v70_v59, %v118_v54  ;;  %v58_v62 = vpop.xlane.xlu0 %57  ;;  %v82_v5 = vpop.xlane.xlu2 %81 }
  0x9e   :  { %v119_v1 = vperm.slane %v58_v62, %v118_v54  ;;  %v147_v13 = vperm.slane %v82_v5, %v118_v54 }
  0x9f   :  { %v128_v3 = vsel %vm120_vm2, %v127_v61, %v126_v0 }
  0xa0   :  { %v121_v4 = vsel %vm120_vm2, %v119_v1, %v117_v2  ;;  %v148_v20 = vsel %vm120_vm2, %v147_v13, %v146_v18 }
  0xa1   :  { %v130_v6 = vsel %vm129_vm3, %v128_v3, %v121_v4 }
  0xa2   :  { %133 = vst.msk [vmem:[#allocation2] sm:$0x3] %vm132_vm4, %v130_v6 }
  0xa5   :  { %v94_v14 = vpop.xlane.xlu0 %93 }
  0xa6   :  { %v154_v17 = vperm.slane %v94_v14, %v118_v54 }
  0xa8   :  { %v155_v21 = vsel %vm120_vm2, %v154_v17, %v153_v19 }
  0xa9   :  { %v156_v22 = vsel %vm129_vm3, %v155_v21, %v148_v20  ;;  %v230_v23 = vld [vmem:[#allocation2] sm:$0x3] }
  0xaa   :  { %158 = vst.msk [vmem:[#allocation3] sm:$0x3] %vm132_vm4, %v156_v22  ;;  %v231_v25 = vmul.f32 0.00390625, %v230_v23 }
  0xb1   :  { %v232_v24 = vld [vmem:[#allocation3] sm:$0x3] }
  0xb2   :  { %v234_v26 = vrot.slane %v232_v24, 6 }
  0xb4   :  { %v237_v27 = vsel %vm236_vm5, %v231_v25, %v234_v26 }
  0xb5   :  { %337 = vmatmul.msk.f32.vlgmr.msra.gmra.mxu0 %vm242_vm6, %v237_v27 }
 0x132   :  { %v263_v29 = vpop.f32.mrf.mxu0 }
 0x133   :  { %v266_v30 = vmax.f32 %v263_v29, 0.0 }
 0x135   :  { %339 = vmatmul.msk.f32.vlgmr.msra.gmra.mxu1 %vm268_vm7, %v266_v30 }
 0x1b2   :  { %v292_v31 = vpop.f32.mrf.mxu1 }
 0x1b3   :  { %v296_v32 = vrot.slane %v292_v31, 2 }
 0x1b5   :  { %v298_v33 = vadd.f32 %v296_v32, %v292_v31 }
 0x1b7   :  { %v340_v34 = vmul.f32 -1.442695, %v298_v33 }
 0x1b9   :  { %345 = vpow2.f32 %v340_v34 }
 0x1bf   :  { %v346_v35 = vpop.eup %345 }
 0x1c0   :  { %v302_v36 = vadd.f32 1.0, %v346_v35 }
 0x1c2   :  { %347 = vrcp.f32 %v302_v36  ;;  %v314_v40 = vand.u32 2147483648, %v302_v36  ;;  %v312_v42 = vand.u32 2147483647, %v302_v36  ;;  %vm308_vm9 = vweird.f32 %v302_v36 }
 0x1c4   :  { %v315_v44 = vor.u32 1.1754944e-38, %v314_v40  ;;  %vm313_vm11 = vcmp.eq.f32.partialorder %v312_v42, 8.507059e+37 }
 0x1c8   :  { %v348_v37 = vpop.eup %347 }
 0x1c9   :  { %v304_v38 = vmul.f32 %v348_v37, %v302_v36  ;;  %vm309_vm8 = vweird.f32 %v348_v37 }
 0x1ca   :  { %vm310_vm10 = vmor %vm308_vm9, %vm309_vm8 }
 0x1cb   :  { %v305_v39 = vsub.f32 1.0, %v304_v38 }
 0x1cd   :  { %v306_v41 = vmul.f32 %v348_v37, %v305_v39 }
 0x1cf   :  { %v307_v43 = vadd.f32 %v348_v37, %v306_v41 }
 0x1d1   :  { %v311_v45 = vsel %vm310_vm10, %v348_v37, %v307_v43 }
 0x1d2   :  { %v316_v46 = vsel %vm313_vm11, %v315_v44, %v311_v45 }
 0x1d3   :  { %319 = vst.msk [vmem:[#allocation7] sm:$0x3] %vm132_vm4, %v316_v46 }
 0x1d4   :  { %330 = dma.vmem_to_hbm [thread:$0]  %s326_s27, 32, %s328_s30, [#allocation6]  }
 0x1d5   :  { %399 = dma.done.wait [#allocation6], 32  }
 0x1d6   :  { %400 = vsyncadd [#allocation6], 4294967264 }
 0x1d7   :  { %335 = vsyncpa [#allocation5], 1 }
 0x1d8   :  { %336 = vsyncpa [#allocation6], 1 }

</bundles_post_ra>
